<compile_context>
chip_gen: v6e
topology: v6e:2x2x1
jax: 0.10.0
libtpu: 0.0.40
codegen_flags: <defaults>
</compile_context>

<pallas_src>
import functools

import jax
import jax.numpy as jnp
from jax.experimental import pallas as pl
from jax.experimental.pallas import tpu as pltpu


def _round_up(x, m):
    return (x + m - 1) // m * m


def _simcse_kernel(q_ref, k_ref, out_ref, *, batch_size, row_tile, scale, eps):
    # q_ref:   (TB, D)  query-row tile of the (padded) embeddings
    # k_ref:   (BP, D)  all (padded) embeddings, resident across the grid
    # out_ref: (TB, 1)  per-row CE loss (0 for padded rows)
    i = pl.program_id(0)

    q = q_ref[...].astype(jnp.float32)            # (TB, D)
    k = k_ref[...].astype(jnp.float32)            # (BP, D)
    tb = q.shape[0]
    bp = k.shape[0]

    # Row-wise L2 normalize (torch F.normalize: x / max(||x||_2, eps)).
    qn = q / jnp.maximum(jnp.sqrt(jnp.sum(q * q, axis=-1, keepdims=True)), eps)
    kn = k / jnp.maximum(jnp.sqrt(jnp.sum(k * k, axis=-1, keepdims=True)), eps)

    # Cosine-similarity tile on the MXU, f32 accumulation.
    sim = jnp.einsum("id,jd->ij", qn, kn,
                     preferred_element_type=jnp.float32)         # (TB, BP)

    row = i * row_tile + jax.lax.broadcasted_iota(jnp.int32, (tb, bp), 0)
    col = jax.lax.broadcasted_iota(jnp.int32, (tb, bp), 1)

    # Exactly the torch order: (sim - eye * 1e12) * 20.
    sim = jnp.where(col == row, sim - 1e12, sim) * scale

    # Mask key columns that only exist because of row padding.
    if bp > batch_size:
        sim = jnp.where(col < batch_size, sim, -1e30)

    # Cross-entropy with SimCSE pair labels y[i] = i ^ 1 (even batch size).
    m = jnp.max(sim, axis=-1, keepdims=True)
    lse = m + jnp.log(jnp.sum(jnp.exp(sim - m), axis=-1, keepdims=True))
    tgt_logit = jnp.sum(jnp.where(col == (row ^ 1), sim, 0.0),
                        axis=-1, keepdims=True)
    loss = lse - tgt_logit                                        # (TB, 1)

    # Zero padded query rows so the wrapper can just sum and divide by B.
    valid = row[:, :1] < batch_size                               # (TB, 1)
    out_ref[...] = jnp.where(valid, loss, 0.0)


def simcse_loss(batch_emb, tem=0.05, *, max_row_tile=256,
                single_tile_limit=2048):
    """Pallas SimCSE forward. Returns a scalar float32 loss.

    batch_emb: (B, D) embeddings, B even (rows 2k / 2k+1 are positive pairs).
               dtype float32 or bfloat16 (kept as-is in HBM).
    tem:       stored by the torch module but unused in its forward
               (the scale is the hardcoded 20); kept for API parity.
    """
    del tem  # the reference torch forward never uses it
    b, d = batch_emb.shape
    assert b % 2 == 0, "SimCSE in-batch pairs require an even batch size"

    # Row-tile selection: a single grid step whenever the whole problem
    # comfortably fits VMEM (typical SimCSE batches); otherwise tile query
    # rows and let the "parallel" grid axis shard across TensorCores.
    if b <= single_tile_limit:
        tb = _round_up(b, 8)
    else:
        tb = max_row_tile
    bp = _round_up(b, tb)
    nt = bp // tb

    x = batch_emb
    if bp != b:
        x = jnp.pad(x, ((0, bp - b), (0, 0)))

    kernel = functools.partial(
        _simcse_kernel,
        batch_size=b, row_tile=tb, scale=20.0, eps=1e-12,
    )

    # TODO(synk): for very large B where the (BP, D) key block plus the
    # (TB, BP) similarity tile no longer fit VMEM (budget 64 MiB on v7x),
    # add a key-axis grid with an online log-sum-exp instead of the single
    # resident full-key block used here.
    row_losses = pl.pallas_call(
        kernel,
        out_shape=jax.ShapeDtypeStruct((bp, 1), jnp.float32),
        grid_spec=pltpu.PrefetchScalarGridSpec(
            num_scalar_prefetch=0,
            grid=(nt,),
            in_specs=[
                pl.BlockSpec((tb, d), lambda i: (i, 0)),   # query row tile
                pl.BlockSpec((bp, d), lambda i: (0, 0)),   # all keys (resident)
            ],
            out_specs=pl.BlockSpec((tb, 1), lambda i: (i, 0)),
        ),
        compiler_params=pltpu.CompilerParams(
            dimension_semantics=("parallel",),
        ),
    )(x, x)

    return jnp.sum(row_losses) / jnp.float32(b)


def _simcse_ref(batch_emb):
    # Pure-JAX reference mirroring the PyTorch forward.
    b = batch_emb.shape[0]
    y = jnp.concatenate(
        [jnp.arange(1, b, 2)[:, None], jnp.arange(0, b, 2)[:, None]],
        axis=1).reshape(b)
    x = batch_emb.astype(jnp.float32)
    nrm = x / jnp.maximum(
        jnp.sqrt(jnp.sum(x * x, axis=1, keepdims=True)), 1e-12)
    sim = nrm @ nrm.T
    sim = sim - jnp.eye(b, dtype=jnp.float32) * 1e12
    sim = sim * 20.0
    logp = jax.nn.log_softmax(sim, axis=-1)
    return -jnp.mean(jnp.take_along_axis(logp, y[:, None], axis=1))


if __name__ == "__main__":
    key = jax.random.PRNGKey(0)

    # Small even batch of paired sentence embeddings: batch=8, hidden=32.
    B, D = 8, 32
    batch_emb = jax.random.normal(key, (B, D), jnp.float32)

    out = simcse_loss(batch_emb, tem=0.05)
    out = jax.block_until_ready(out)

    ref = _simcse_ref(batch_emb)
    assert jnp.allclose(out, ref, rtol=1e-4, atol=1e-5), (out, ref)

    print("KERNEL_OK")
</pallas_src>

<mosaic_0001>
module attributes {stable_mosaic.version = 11 : i64} {
  func.func @_simcse_kernel(%arg0: i32, %arg1: memref<8x32xf32, #tpu.memory_space<vmem>>, %arg2: memref<8x32xf32, #tpu.memory_space<vmem>>, %arg3: memref<8x1xf32, #tpu.memory_space<vmem>>) attributes {dimension_semantics = [#tpu.dimension_semantics<parallel>], iteration_bounds = array<i64: 1>, scalar_prefetch = 0 : i64, scratch_operands = 0 : i64, tpu.core_type = #tpu.core_type<tc>, window_params = [{transform_indices = @transform_0, window_bounds = array<i64: 8, 32>}, {pipeline_mode = #tpu.pipeline_mode<synchronous>, transform_indices = @transform_1, window_bounds = array<i64: 8, 32>}, {transform_indices = @transform_2, window_bounds = array<i64: 8, 1>}]} {
    %c0 = arith.constant 0 : index
    %c0_0 = arith.constant 0 : index
    %0 = vector.load %arg1[%c0, %c0_0] : memref<8x32xf32, #tpu.memory_space<vmem>>, vector<8x32xf32>
    %c0_1 = arith.constant 0 : index
    %c0_2 = arith.constant 0 : index
    %1 = vector.load %arg2[%c0_1, %c0_2] : memref<8x32xf32, #tpu.memory_space<vmem>>, vector<8x32xf32>
    %2 = arith.mulf %0, %0 : vector<8x32xf32>
    %cst = arith.constant dense<0.000000e+00> : vector<8xf32>
    %3 = vector.multi_reduction <add>, %2, %cst [1] : vector<8x32xf32> to vector<8xf32>
    %4 = vector.shape_cast %3 : vector<8xf32> to vector<8x1xf32>
    %5 = math.sqrt %4 : vector<8x1xf32>
    %cst_3 = arith.constant 9.99999996E-13 : f32
    %6 = vector.broadcast %cst_3 : f32 to vector<8x1xf32>
    %7 = arith.maximumf %5, %6 : vector<8x1xf32>
    %8 = vector.broadcast %7 : vector<8x1xf32> to vector<8x32xf32>
    %9 = arith.divf %0, %8 : vector<8x32xf32>
    %10 = arith.mulf %1, %1 : vector<8x32xf32>
    %cst_4 = arith.constant dense<0.000000e+00> : vector<8xf32>
    %11 = vector.multi_reduction <add>, %10, %cst_4 [1] : vector<8x32xf32> to vector<8xf32>
    %12 = vector.shape_cast %11 : vector<8xf32> to vector<8x1xf32>
    %13 = math.sqrt %12 : vector<8x1xf32>
    %cst_5 = arith.constant 9.99999996E-13 : f32
    %14 = vector.broadcast %cst_5 : f32 to vector<8x1xf32>
    %15 = arith.maximumf %13, %14 : vector<8x1xf32>
    %16 = vector.broadcast %15 : vector<8x1xf32> to vector<8x32xf32>
    %17 = arith.divf %1, %16 : vector<8x32xf32>
    "tpu.trace_start"() <{level = 10 : i32, message = "id,jd->ij"}> : () -> ()
    %cst_6 = arith.constant dense<0.000000e+00> : vector<8x8xf32>
    %18 = tpu.matmul %9, %17, %cst_6 {dimension_numbers = #tpu.dot_dimension_numbers<[1], [1], [0], [0], [0, 0, 1, 0], [], []>} : vector<8x32xf32>, vector<8x32xf32>, vector<8x8xf32> -> vector<8x8xf32>
    "tpu.trace_stop"() : () -> ()
    %c8_i32 = arith.constant 8 : i32
    %19 = arith.muli %arg0, %c8_i32 : i32
    %20 = tpu.iota {dimensions = array<i32: 0>} : vector<8x8xi32>
    %21 = vector.broadcast %19 : i32 to vector<8x8xi32>
    %22 = arith.addi %21, %20 : vector<8x8xi32>
    %23 = tpu.iota {dimensions = array<i32: 1>} : vector<8x8xi32>
    %24 = arith.cmpi eq, %23, %22 : vector<8x8xi32>
    %cst_7 = arith.constant 9.99999995E+11 : f32
    %25 = vector.broadcast %cst_7 : f32 to vector<8x8xf32>
    %26 = arith.subf %18, %25 : vector<8x8xf32>
    %27 = arith.select %24, %26, %18 : vector<8x8xi1>, vector<8x8xf32>
    %cst_8 = arith.constant 2.000000e+01 : f32
    %28 = vector.broadcast %cst_8 : f32 to vector<8x8xf32>
    %29 = arith.mulf %27, %28 : vector<8x8xf32>
    %cst_9 = arith.constant dense<0xFF800000> : vector<8xf32>
    %30 = vector.multi_reduction <maximumf>, %29, %cst_9 [1] : vector<8x8xf32> to vector<8xf32>
    %31 = vector.shape_cast %30 : vector<8xf32> to vector<8x1xf32>
    %32 = vector.broadcast %31 : vector<8x1xf32> to vector<8x8xf32>
    %33 = arith.subf %29, %32 : vector<8x8xf32>
    %34 = math.exp %33 : vector<8x8xf32>
    %cst_10 = arith.constant dense<0.000000e+00> : vector<8xf32>
    %35 = vector.multi_reduction <add>, %34, %cst_10 [1] : vector<8x8xf32> to vector<8xf32>
    %36 = vector.shape_cast %35 : vector<8xf32> to vector<8x1xf32>
    %37 = math.log %36 : vector<8x1xf32>
    %38 = arith.addf %31, %37 : vector<8x1xf32>
    %c1_i32 = arith.constant 1 : i32
    %39 = vector.broadcast %c1_i32 : i32 to vector<8x8xi32>
    %40 = arith.xori %22, %39 : vector<8x8xi32>
    %41 = arith.cmpi eq, %23, %40 : vector<8x8xi32>
    %cst_11 = arith.constant 0.000000e+00 : f32
    %42 = vector.broadcast %cst_11 : f32 to vector<8x8xf32>
    %43 = arith.select %41, %29, %42 : vector<8x8xi1>, vector<8x8xf32>
    %cst_12 = arith.constant dense<0.000000e+00> : vector<8xf32>
    %44 = vector.multi_reduction <add>, %43, %cst_12 [1] : vector<8x8xf32> to vector<8xf32>
    %45 = vector.shape_cast %44 : vector<8xf32> to vector<8x1xf32>
    %46 = arith.subf %38, %45 : vector<8x1xf32>
    %47 = vector.extract_strided_slice %22 {offsets = [0, 0], sizes = [8, 1], strides = [1, 1]} : vector<8x8xi32> to vector<8x1xi32>
    %c8_i32_13 = arith.constant 8 : i32
    %48 = vector.broadcast %c8_i32_13 : i32 to vector<8x1xi32>
    %49 = arith.cmpi slt, %47, %48 : vector<8x1xi32>
    %cst_14 = arith.constant 0.000000e+00 : f32
    %50 = vector.broadcast %cst_14 : f32 to vector<8x1xf32>
    %51 = arith.select %49, %46, %50 : vector<8x1xi1>, vector<8x1xf32>
    %c0_15 = arith.constant 0 : index
    %c0_16 = arith.constant 0 : index
    %52 = vector.load %arg3[%c0_15, %c0_16] : memref<8x1xf32, #tpu.memory_space<vmem>>, vector<8x1xf32>
    tpu.vector_store %arg3[%c0_15, %c0_16], %51 {strides = array<i32>} : memref<8x1xf32, #tpu.memory_space<vmem>>, vector<8x1xf32>,
    return
  }
  func.func @transform_0(%arg0: i32) -> (i32, i32) {
    %c0_i32 = arith.constant 0 : i32
    %c0_i32_0 = arith.constant 0 : i32
    return %arg0, %c0_i32 : i32, i32
  }
  func.func @transform_1(%arg0: i32) -> (i32, i32) {
    %c0_i32 = arith.constant 0 : i32
    %c0_i32_0 = arith.constant 0 : i32
    %c0_i32_1 = arith.constant 0 : i32
    return %c0_i32, %c0_i32_0 : i32, i32
  }
  func.func @transform_2(%arg0: i32) -> (i32, i32) {
    %c0_i32 = arith.constant 0 : i32
    %c0_i32_0 = arith.constant 0 : i32
    return %arg0, %c0_i32 : i32, i32
  }
}

</mosaic_0001>

<bundles_post_ra>
// kernel: tpu_custom_call.1
= control target key start
LH: loop header
LB: loop body
LE: loop exit
PB: predicated region body
PF: predicated region fallthrough
CT: control target
= control target key end

     0   :  { %7 = vsyncpa [#allocation3], 0  ;;  %s285_s0 = inlined_call_operand.hbm [shape: f32[8,32], index: 0, kind: input, shape index: {}]   ;;  %s286_s1 = inlined_call_operand.hbm [shape: f32[8,32], index: 1, kind: input, shape index: {}]   ;;  %s287_s2 = inlined_call_operand.vmem [shape: f32[8,1], index: 2, kind: output, shape index: {}]  }
   0x1   :  { %8 = vsyncpa [#allocation5], 0  ;;  %s253_s9 = smov [#allocation2]   ;;  %s254_s11 = smov [#allocation4]  }
   0x2   :  { %s15_s10 = sshll.u32 %s253_s9, 4  ;;  %s25_s12 = sshll.u32 %s254_s11, 4  ;;  %s16_s10 = int_to_ptr.vmem [resolvable:$true] %s15_s10  ;;  %s26_s12 = int_to_ptr.vmem [resolvable:$true] %s25_s12 }
   0x3   :  { %s217_s13 = scalar_lea.vmem %s16_s10, 128  ;;  %p222_p1 = scmp.lt.s32.totalorder %s16_s10, %s16_s10 }
   0x4   :  { %p218_p0 = scmp.ne.s32.totalorder %s16_s10, %s217_s13  ;;  %p223_p2 = scmp.lt.s32.totalorder %s217_s13, %s217_s13 }
   0x6   :  { %p224_p3 = por %p223_p2, %p222_p1 }
   0x8   :  { %p225_p4 = pnand %p224_p3, %p218_p0 }
   0xa   :  { %228 = shalt.err (!%p225_p4)
}
   0xb   :  { %18 = dma.hbm_to_vmem [thread:$0]  %s285_s0, 128, %s16_s10, [#allocation3]  }
   0xc   :  { %s237_s16 = scalar_lea.vmem %s26_s12, 128  ;;  %p242_p6 = scmp.lt.s32.totalorder %s26_s12, %s26_s12 }
   0xd   :  { %p238_p5 = scmp.ne.s32.totalorder %s26_s12, %s237_s16  ;;  %p243_p7 = scmp.lt.s32.totalorder %s237_s16, %s237_s16 }
   0xf   :  { %p244_p8 = por %p243_p7, %p242_p6 }
  0x11   :  { %p245_p9 = pnand %p244_p8, %p238_p5 }
  0x13   :  { %248 = shalt.err (!%p245_p9)
}
  0x14   :  { %28 = dma.hbm_to_vmem [thread:$0]  %s286_s1, 128, %s26_s12, [#allocation5]  }
  0x15   :  { %249 = dma.done.wait [#allocation3], 128  }
  0x16   :  { %250 = vsyncadd [#allocation3], 4294967168 }
  0x17   :  { %251 = dma.done.wait [#allocation5], 128  }
  0x18   :  { %252 = vsyncadd [#allocation5], 4294967168  ;;  %v36_v0 = vld [vmem:[#allocation4] sm:$0xff]  ;;  %vm38_vm0 = vcmask 261120   ;;  %v35_v1 = vld [vmem:[#allocation2] sm:$0xff]  ;;  %v255_v6 = vmov 0.0   ;;  %v143_v25 = vlaneseq }
  0x19   :  { %v52_v2 = vmul.f32 %v36_v0, %v36_v0  ;;  %v37_v3 = vmul.f32 %v35_v1, %v35_v1  ;;  %188 = vmatprep.subr.mxu0 %v255_v6  ;;  %vm256_vm1 = vmmov 0   ;;  %vm153_vm7 = vcmask 64512  }
  0x1a   :  { %190 = vmatprep.mubr.msk.f32.mxu0 %vm256_vm1, %v255_v6  ;;  %v144_v26 = vshrl.u32 %v143_v25, 7  ;;  %v148_v27 = vand.u32 127, %v143_v25  ;;  %vm175_vm9 = vcmask 7168  }
  0x1b   :  { %v53_v4 = vsel %vm38_vm0, %v52_v2, 0.0  ;;  %v39_v5 = vsel %vm38_vm0, %v37_v3, 0.0 }
  0x1c   :  { %54 = vadd.xlane.f32.xlu0 %v53_v4  ;;  %v166_v28 = vxor.u32 1, %v144_v26  ;;  %vm149_vm6 = vcmp.eq.s32.totalorder %v148_v27, %v144_v26 }
  0x1e   :  { %vm167_vm8 = vcmp.eq.s32.totalorder %v148_v27, %v166_v28 }
  0x20   :  { %40 = vadd.xlane.f32.xlu0 %v39_v5 }
  0xa5   :  { %v55_v7 = vpop.xlane.xlu0 %54 }
  0xa6   :  { %197 = vrsqrt.f32 %v55_v7  ;;  %vm58_vm2 = vcmp.eq.f32.partialorder %v55_v7, inf  ;;  %v61_v11 = vand.u32 2147483648, %v55_v7  ;;  %vm60_vm3 = vcmp.eq.f32.partialorder %v55_v7, 0.0 }
  0xa9   :  { %v41_v8 = vpop.xlane.xlu0 %40 }
  0xaa   :  { %199 = vrsqrt.f32 %v41_v8  ;;  %vm44_vm4 = vcmp.eq.f32.partialorder %v41_v8, inf  ;;  %v47_v17 = vand.u32 2147483648, %v41_v8  ;;  %vm46_vm5 = vcmp.eq.f32.partialorder %v41_v8, 0.0 }
  0xb3   :  { %v198_v9 = vpop.eup %197 }
  0xb4   :  { %v57_v10 = vmul.f32 %v198_v9, %v55_v7 }
  0xb6   :  { %v59_v12 = vsel %vm58_vm2, %v55_v7, %v57_v10 }
  0xb7   :  { %v200_v13 = vpop.eup %199  ;;  %v62_v14 = vsel %vm60_vm3, %v61_v11, %v59_v12 }
  0xb8   :  { %v63_v15 = vmax.f32 %v62_v14, 1e-12  ;;  %v43_v16 = vmul.f32 %v200_v13, %v41_v8 }
  0xba   :  { %201 = vrcp.f32 %v63_v15  ;;  %v45_v18 = vsel %vm44_vm4, %v41_v8, %v43_v16 }
  0xbb   :  { %v48_v19 = vsel %vm46_vm5, %v47_v17, %v45_v18 }
  0xbc   :  { %v49_v20 = vmax.f32 %v48_v19, 1e-12 }
  0xbe   :  { %203 = vrcp.f32 %v49_v20 }
  0xc7   :  { %v202_v21 = vpop.eup %201 }
  0xc8   :  { %v65_v22 = vmul.f32 %v202_v21, %v36_v0 }
  0xca   :  { %189 = vmatpush3.xpose.msk.msra.mxu0 %vm38_vm0, %v65_v22 }
  0xcb   :  { %v204_v23 = vpop.eup %203 }
  0xcc   :  { %v51_v24 = vmul.f32 %v204_v23, %v35_v1 }
  0xce   :  { %191 = vmatmul.mubr.msk.f32.vlgmr.msra.gmra.mxu0 %vm38_vm0, %v51_v24 }
 0x18e   :  { %v138_v29 = vpop.f32.mrf.mxu0 }
 0x18f   :  { %v185_v30 = vadd.f32 -1e+12, %v138_v29 }
 0x190   :  { %v192_v31 = vpop.f32.mrf.mxu0 }
 0x191   :  { %v151_v32 = vsel %vm149_vm6, %v185_v30, %v138_v29 }
 0x192   :  { %v152_v33 = vmul.f32 20.0, %v151_v32 }
 0x194   :  { %v154_v34 = vsel %vm153_vm7, %v152_v33, -inf  ;;  %v168_v35 = vsel %vm167_vm8, %v152_v33, 0.0 }
 0x195   :  { %155 = vmax.xlane.f32.xlu1 %v154_v34  ;;  %v169_v36 = vsel %vm153_vm7, %v168_v35, 0.0 }
 0x196   :  { %170 = vadd.xlane.f32.xlu0 %v169_v36 }
 0x21e   :  { %v156_v37 = vpop.xlane.xlu1 %155 }
 0x21f   :  { %v157_v38 = vsub.f32 %v152_v33, %v156_v37  ;;  %v171_v46 = vpop.xlane.xlu0 %170 }
 0x221   :  { %v158_v39 = vmul.f32 1.442695, %v157_v38 }
 0x223   :  { %205 = vpow2.f32 %v158_v39 }
 0x230   :  { %v206_v40 = vpop.eup %205 }
 0x231   :  { %v160_v41 = vsel %vm153_vm7, %v206_v40, 0.0 }
 0x232   :  { %161 = vadd.xlane.f32.xlu1 %v160_v41 }
 0x2bb   :  { %v162_v42 = vpop.xlane.xlu1 %161 }
 0x2bc   :  { %207 = vlog2.f32 %v162_v42 }
 0x2c9   :  { %v208_v43 = vpop.eup %207 }
 0x2ca   :  { %v164_v44 = vmul.f32 0.6931472, %v208_v43 }
 0x2cc   :  { %v165_v45 = vadd.f32 %v164_v44, %v156_v37 }
 0x2ce   :  { %v172_v47 = vsub.f32 %v165_v45, %v171_v46 }
 0x2d0   :  { %176 = vst.msk [vmem:[%s287_s2] sm:$0xff] %vm175_vm9, %v172_v47 }
 0x2d1   :  { %181 = vsyncpa [#allocation3], 1 }
 0x2d2   :  { %182 = vsyncpa [#allocation5], 1 }

</bundles_post_ra>
